<compile_context>
chip_gen: v7x
topology: tpu7x:2x2x1
jax: 0.10.0
libtpu: 0.0.40
codegen_flags: <defaults>
</compile_context>

<pallas_src>
import functools

import jax
import jax.numpy as jnp
import numpy as np
from jax.experimental import pallas as pl
from jax.experimental.pallas import tpu as pltpu


def _round_up(x, m):
    return ((x + m - 1) // m) * m


# ------------------------------ Pallas kernel ------------------------------- #

def _down_block_kernel(x_ref, w1_ref, b1_ref, g1_ref, be1_ref,
                       w2_ref, b2_ref, g2_ref, be2_ref,
                       mz_ref, mo_ref, *rest,
                       taps_off, m, cin, cout, cpg, inv_count, eps):
    """Fused (pooled) DoubleConv for ONE sample, transposed layout.

    Layout: channels on sublanes, flattened halo-padded spatial on lanes.

    x_ref   : (cin, xrows) bf16  pooled + halo-padded sample, flattened
                                 row-major over (pad_y, pad_x) and placed at
                                 lane offset r0 = wp+1 (so conv1 and conv2 use
                                 the same static tap offsets); other lanes = 0.
    w*_ref  : (cout, 9*C) bf16   K-stacked per-tap weights, column t*C + c.
    b/g/be  : (cout, 1) f32      bias / GroupNorm gamma / beta.
    mz/mo   : (1, m) f32         validity masks for conv1 / conv2 out columns.
    rest    : [gmap (G,cout), gmapt (cout,G)]  (only if cpg > 1),
              o_ref (cout, m) f32 lane-dense wide output (already NCHW),
              lhs1 / z / lhs2 VMEM bf16 scratch.
    """
    if cpg > 1:
        gmap_ref, gmapt_ref, o_ref, lhs1_ref, z_ref, lhs2_ref = rest
    else:
        o_ref, lhs1_ref, z_ref, lhs2_ref = rest

    def conv3x3(src_ref, lhs_ref, w_ref, b_ref, c):
        # Pack the 9 taps into one (9*c, m) K-stacked LHS, then a single MXU
        # matmul (bf16 operands, f32 accumulation): no per-tap accumulates.
        for t, off in enumerate(taps_off):
            lhs_ref[t * c:(t + 1) * c, :] = src_ref[:, pl.ds(off, m)]
        return jnp.dot(w_ref[...], lhs_ref[...],
                       preferred_element_type=jnp.float32) + b_ref[...]

    def gn_relu(y, mask, gamma, beta):
        # Per-sample GroupNorm + ReLU, all statistics in f32.  Invalid
        # (halo / padding / round-up) columns are masked to exact zeros, which
        # is also exactly what conv2's implicit zero padding needs.
        mean_c = jnp.sum(y * mask, axis=1, keepdims=True) * inv_count
        if cpg > 1:   # channel stats -> group stats -> back to channels
            mean_c = jnp.dot(
                gmapt_ref[...],
                jnp.dot(gmap_ref[...], mean_c,
                        preferred_element_type=jnp.float32),
                preferred_element_type=jnp.float32) * (1.0 / cpg)
        d = (y - mean_c) * mask
        var_c = jnp.sum(d * d, axis=1, keepdims=True) * inv_count
        if cpg > 1:
            var_c = jnp.dot(
                gmapt_ref[...],
                jnp.dot(gmap_ref[...], var_c,
                        preferred_element_type=jnp.float32),
                preferred_element_type=jnp.float32) * (1.0 / cpg)
        out = d * jax.lax.rsqrt(var_c + eps) * gamma + beta
        return jnp.maximum(out, 0.0) * mask

    # conv1 -> GN -> ReLU : intermediate stays in VMEM, never touches HBM.
    y1 = conv3x3(x_ref, lhs1_ref, w1_ref, b1_ref, cin)
    z1 = gn_relu(y1, mz_ref[...], g1_ref[...], be1_ref[...])
    z_ref[:, :m] = z1.astype(z_ref.dtype)
    z_ref[:, m:] = jnp.zeros((cout, z_ref.shape[1] - m), z_ref.dtype)

    # conv2 -> GN -> ReLU : lane-dense (m % 128 == 0) f32 output store.
    y2 = conv3x3(z_ref, lhs2_ref, w2_ref, b2_ref, cout)
    out = gn_relu(y2, mo_ref[...], g2_ref[...], be2_ref[...])
    o_ref[...] = out.astype(o_ref.dtype)


# ------------------------------- JAX wrapper --------------------------------- #

def down_forward(x_nchw, params, num_groups=32, eps=1e-5):
    """Down.forward(x, emb=None) with attention_heads=-1, time_enc_dim=-1."""
    # TODO(synk): attention / time-embedding / dropout branches of DoubleConv
    # are disabled by Down's defaults and therefore not implemented here.
    n, cin, hin, win = x_nchw.shape
    assert hin % 2 == 0 and win % 2 == 0
    cout = params["w1"].shape[0]
    assert cout % num_groups == 0
    cpg = cout // num_groups

    h, w = hin // 2, win // 2            # post-pool spatial
    hp, wp = h + 2, w + 2                # halo-padded
    pimg = hp * wp                       # flattened padded image length
    r0 = wp + 1                          # conv-chain shift (data start lane)
    m = _round_up(pimg + r0, 128)        # wide-output lanes (lane-dense)
    xrows = _round_up(m + 2 * wp + 2, 128)   # lanes incl. largest tap offset

    # --- wrapper glue (NCHW throughout; no layout transposes anywhere) -------
    # 2x2 max pool + halo pad + row-major flatten + bf16 cast.  This is the
    # only HBM-materialized intermediate and it is far smaller than the input.
    # TODO(synk): fold the pool into the kernel (or use allow_input_fusion) to
    # drop even this small materialization.
    xp = x_nchw.reshape(n, cin, h, 2, w, 2).max(axis=(3, 5))
    xp = jnp.pad(xp, ((0, 0), (0, 0), (1, 1), (1, 1))).reshape(n, cin, pimg)
    xflat = jnp.pad(xp, ((0, 0), (0, 0), (r0, xrows - r0 - pimg)))
    xflat = xflat.astype(jnp.bfloat16)

    # K-stacked per-tap weight matrices: column t*C + c with tap t = dy*3 + dx.
    w1k = jnp.transpose(params["w1"], (0, 2, 3, 1)).reshape(cout, 9 * cin)
    w2k = jnp.transpose(params["w2"], (0, 2, 3, 1)).reshape(cout, 9 * cout)
    w1k, w2k = w1k.astype(jnp.bfloat16), w2k.astype(jnp.bfloat16)

    taps_off = tuple(dy * wp + dx for dy in range(3) for dx in range(3))

    # Static validity masks over the wide (padded) grid, lane-oriented (1, m):
    #   mask_z -> columns holding valid conv1 outputs (shifted by r0),
    #   mask_o -> columns holding valid conv2 outputs (unshifted).
    rr = np.arange(m)
    uz = rr - r0
    mask_z = ((uz >= 0) & (uz < pimg)
              & (uz % wp < w) & (uz // wp < h)).astype(np.float32)
    mask_o = ((rr < pimg) & (rr % wp < w) & (rr // wp < h)).astype(np.float32)

    col = lambda v: v.reshape(cout, 1).astype(jnp.float32)
    rep = lambda shape: pl.BlockSpec(shape, lambda i: (0,) * len(shape))

    inputs = [xflat, w1k, col(params["b1"]), col(params["g1"]),
              col(params["be1"]), w2k, col(params["b2"]), col(params["g2"]),
              col(params["be2"]), jnp.asarray(mask_z[None, :]),
              jnp.asarray(mask_o[None, :])]
    in_specs = [
        pl.BlockSpec((None, cin, xrows), lambda i: (i, 0, 0)),
        rep((cout, 9 * cin)), rep((cout, 1)), rep((cout, 1)), rep((cout, 1)),
        rep((cout, 9 * cout)), rep((cout, 1)), rep((cout, 1)), rep((cout, 1)),
        rep((1, m)), rep((1, m)),
    ]
    if cpg > 1:   # channel->group aggregation matrices only when they matter
        gmap = (np.arange(num_groups)[:, None]
                == (np.arange(cout)[None, :] // cpg)).astype(np.float32)
        inputs += [jnp.asarray(gmap), jnp.asarray(gmap.T)]
        in_specs += [rep((num_groups, cout)), rep((cout, num_groups))]

    kernel = functools.partial(
        _down_block_kernel, taps_off=taps_off, m=m, cin=cin, cout=cout,
        cpg=cpg, inv_count=1.0 / float(h * w), eps=eps)

    out_wide = pl.pallas_call(
        kernel,
        out_shape=jax.ShapeDtypeStruct((n, cout, m), jnp.float32),
        grid=(n,),
        in_specs=in_specs,
        out_specs=pl.BlockSpec((None, cout, m), lambda i: (i, 0, 0)),
        scratch_shapes=[pltpu.VMEM((9 * cin, m), jnp.bfloat16),   # conv1 LHS
                        pltpu.VMEM((cout, xrows), jnp.bfloat16),  # intermediate
                        pltpu.VMEM((9 * cout, m), jnp.bfloat16)], # conv2 LHS
        compiler_params=pltpu.CompilerParams(
            dimension_semantics=("parallel",),      # batch -> v7x's 2 TCs
            vmem_limit_bytes=32 * 1024 * 1024),
    )(*inputs)
    # TODO(synk): for production spatial sizes add an HW grid axis with a
    # two-pass GroupNorm (accumulate sums across spatial tiles) and/or fold
    # several samples per step, sized per-generation VMEM (64 MiB on v7x).

    # Drop halo / round-up columns of the wide output; result is already NCHW.
    return out_wide[:, :, :pimg].reshape(n, cout, hp, wp)[:, :, :h, :w]


# ---------------------------- pure-JAX reference ----------------------------- #

def _ref_block(x, w, b, gamma, beta, groups=32, eps=1e-5,
               operand_dtype=jnp.float32):
    y = jax.lax.conv_general_dilated(
        x.astype(operand_dtype), w.astype(operand_dtype), (1, 1),
        ((1, 1), (1, 1)), dimension_numbers=("NCHW", "OIHW", "NCHW"),
        preferred_element_type=jnp.float32) + b[None, :, None, None]
    n, c, hh, ww = y.shape
    yg = y.reshape(n, groups, c // groups, hh, ww)
    mean = yg.mean(axis=(2, 3, 4), keepdims=True)
    var = ((yg - mean) ** 2).mean(axis=(2, 3, 4), keepdims=True)
    yn = ((yg - mean) / jnp.sqrt(var + eps)).reshape(n, c, hh, ww)
    return jnp.maximum(yn * gamma[None, :, None, None]
                       + beta[None, :, None, None], 0.0)


def down_reference(x_nchw, p, operand_dtype=jnp.float32):
    x = jax.lax.reduce_window(x_nchw, -jnp.inf, jax.lax.max,
                              (1, 1, 2, 2), (1, 1, 2, 2), "VALID")
    x = _ref_block(x, p["w1"], p["b1"], p["g1"], p["be1"],
                   operand_dtype=operand_dtype)
    x = _ref_block(x, p["w2"], p["b2"], p["g2"], p["be2"],
                   operand_dtype=operand_dtype)
    return x


# ----------------------------------- main ------------------------------------ #

if __name__ == "__main__":
    in_ch, out_ch = 4, 32          # out_ch must be divisible by GroupNorm(32)
    n, hin, win = 2, 16, 16

    key = jax.random.PRNGKey(0)
    ks = jax.random.split(key, 9)
    params = {
        "w1": 0.1 * jax.random.normal(ks[0], (out_ch, in_ch, 3, 3), jnp.float32),
        "b1": 0.1 * jax.random.normal(ks[1], (out_ch,), jnp.float32),
        "g1": 1.0 + 0.1 * jax.random.normal(ks[2], (out_ch,), jnp.float32),
        "be1": 0.1 * jax.random.normal(ks[3], (out_ch,), jnp.float32),
        "w2": 0.1 * jax.random.normal(ks[4], (out_ch, out_ch, 3, 3), jnp.float32),
        "b2": 0.1 * jax.random.normal(ks[5], (out_ch,), jnp.float32),
        "g2": 1.0 + 0.1 * jax.random.normal(ks[6], (out_ch,), jnp.float32),
        "be2": 0.1 * jax.random.normal(ks[7], (out_ch,), jnp.float32),
    }
    x = jax.random.normal(ks[8], (n, in_ch, hin, win), jnp.float32)

    out = jax.block_until_ready(jax.jit(down_forward)(x, params))
    assert out.shape == (n, out_ch, hin // 2, win // 2), out.shape

    # Primary check: reference with the same bf16 MXU operand quantization
    # (f32 accumulation / GroupNorm everywhere) -> tight tolerance.
    ref_bf16 = jax.block_until_ready(
        down_reference(x, params, operand_dtype=jnp.bfloat16))
    err = float(np.max(np.abs(np.asarray(out) - np.asarray(ref_bf16))))
    assert np.allclose(np.asarray(out), np.asarray(ref_bf16),
                       atol=2e-3, rtol=2e-3), err

    # Sanity check vs the pure-f32 reference: differences are bounded by the
    # bf16 operand rounding requested by the performance review.
    ref_f32 = jax.block_until_ready(down_reference(x, params))
    err32 = float(np.max(np.abs(np.asarray(out) - np.asarray(ref_f32))))
    assert np.allclose(np.asarray(out), np.asarray(ref_f32),
                       atol=1e-1, rtol=1e-1), err32

    print("KERNEL_OK")
</pallas_src>

<mosaic_0001>
module attributes {stable_mosaic.version = 11 : i64} {
  func.func @_down_block_kernel(%arg0: i32, %arg1: memref<1x4x256xbf16, #tpu.memory_space<vmem>>, %arg2: memref<32x36xbf16, #tpu.memory_space<vmem>>, %arg3: memref<32x1xf32, #tpu.memory_space<vmem>>, %arg4: memref<32x1xf32, #tpu.memory_space<vmem>>, %arg5: memref<32x1xf32, #tpu.memory_space<vmem>>, %arg6: memref<32x288xbf16, #tpu.memory_space<vmem>>, %arg7: memref<32x1xf32, #tpu.memory_space<vmem>>, %arg8: memref<32x1xf32, #tpu.memory_space<vmem>>, %arg9: memref<32x1xf32, #tpu.memory_space<vmem>>, %arg10: memref<1x128xf32, #tpu.memory_space<vmem>>, %arg11: memref<1x128xf32, #tpu.memory_space<vmem>>, %arg12: memref<1x32x128xf32, #tpu.memory_space<vmem>>, %arg13: memref<36x128xbf16, #tpu.memory_space<vmem>>, %arg14: memref<32x256xbf16, #tpu.memory_space<vmem>>, %arg15: memref<288x128xbf16, #tpu.memory_space<vmem>>) attributes {dimension_semantics = [#tpu.dimension_semantics<parallel>], iteration_bounds = array<i64: 2>, scalar_prefetch = 0 : i64, scratch_operands = 3 : i64, tpu.core_type = #tpu.core_type<tc>, window_params = [{transform_indices = @transform_0, window_bounds = array<i64: 1, 4, 256>}, {pipeline_mode = #tpu.pipeline_mode<synchronous>, transform_indices = @transform_1, window_bounds = array<i64: 32, 36>}, {pipeline_mode = #tpu.pipeline_mode<synchronous>, transform_indices = @transform_2, window_bounds = array<i64: 32, 1>}, {pipeline_mode = #tpu.pipeline_mode<synchronous>, transform_indices = @transform_3, window_bounds = array<i64: 32, 1>}, {pipeline_mode = #tpu.pipeline_mode<synchronous>, transform_indices = @transform_4, window_bounds = array<i64: 32, 1>}, {pipeline_mode = #tpu.pipeline_mode<synchronous>, transform_indices = @transform_5, window_bounds = array<i64: 32, 288>}, {pipeline_mode = #tpu.pipeline_mode<synchronous>, transform_indices = @transform_6, window_bounds = array<i64: 32, 1>}, {pipeline_mode = #tpu.pipeline_mode<synchronous>, transform_indices = @transform_7, window_bounds = array<i64: 32, 1>}, {pipeline_mode = #tpu.pipeline_mode<synchronous>, transform_indices = @transform_8, window_bounds = array<i64: 32, 1>}, {pipeline_mode = #tpu.pipeline_mode<synchronous>, transform_indices = @transform_9, window_bounds = array<i64: 1, 128>}, {pipeline_mode = #tpu.pipeline_mode<synchronous>, transform_indices = @transform_10, window_bounds = array<i64: 1, 128>}, {transform_indices = @transform_11, window_bounds = array<i64: 1, 32, 128>}]} {
    %c0 = arith.constant 0 : index
    %c0_0 = arith.constant 0 : index
    %c0_1 = arith.constant 0 : index
    %0 = vector.load %arg1[%c0, %c0_0, %c0_1] : memref<1x4x256xbf16, #tpu.memory_space<vmem>>, vector<1x4x128xbf16>
    %1 = vector.shape_cast %0 : vector<1x4x128xbf16> to vector<4x128xbf16>
    %c0_2 = arith.constant 0 : index
    %c0_3 = arith.constant 0 : index
    %2 = vector.load %arg13[%c0_2, %c0_3] : memref<36x128xbf16, #tpu.memory_space<vmem>>, vector<4x128xbf16>
    tpu.vector_store %arg13[%c0_2, %c0_3], %1 {strides = array<i32>} : memref<36x128xbf16, #tpu.memory_space<vmem>>, vector<4x128xbf16>,
    %c0_4 = arith.constant 0 : index
    %c0_5 = arith.constant 0 : index
    %c1 = arith.constant 1 : index
    %3 = vector.load %arg1[%c0_4, %c0_5, %c1] : memref<1x4x256xbf16, #tpu.memory_space<vmem>>, vector<1x4x128xbf16>
    %4 = vector.shape_cast %3 : vector<1x4x128xbf16> to vector<4x128xbf16>
    %c4 = arith.constant 4 : index
    %c0_6 = arith.constant 0 : index
    %5 = vector.load %arg13[%c4, %c0_6] : memref<36x128xbf16, #tpu.memory_space<vmem>>, vector<4x128xbf16>
    tpu.vector_store %arg13[%c4, %c0_6], %4 {strides = array<i32>} : memref<36x128xbf16, #tpu.memory_space<vmem>>, vector<4x128xbf16>,
    %c0_7 = arith.constant 0 : index
    %c0_8 = arith.constant 0 : index
    %c2 = arith.constant 2 : index
    %6 = vector.load %arg1[%c0_7, %c0_8, %c2] : memref<1x4x256xbf16, #tpu.memory_space<vmem>>, vector<1x4x128xbf16>
    %7 = vector.shape_cast %6 : vector<1x4x128xbf16> to vector<4x128xbf16>
    %c8 = arith.constant 8 : index
    %c0_9 = arith.constant 0 : index
    %8 = vector.load %arg13[%c8, %c0_9] : memref<36x128xbf16, #tpu.memory_space<vmem>>, vector<4x128xbf16>
    tpu.vector_store %arg13[%c8, %c0_9], %7 {strides = array<i32>} : memref<36x128xbf16, #tpu.memory_space<vmem>>, vector<4x128xbf16>,
    %c0_10 = arith.constant 0 : index
    %c0_11 = arith.constant 0 : index
    %c10 = arith.constant 10 : index
    %9 = vector.load %arg1[%c0_10, %c0_11, %c10] : memref<1x4x256xbf16, #tpu.memory_space<vmem>>, vector<1x4x128xbf16>
    %10 = vector.shape_cast %9 : vector<1x4x128xbf16> to vector<4x128xbf16>
    %c12 = arith.constant 12 : index
    %c0_12 = arith.constant 0 : index
    %11 = vector.load %arg13[%c12, %c0_12] : memref<36x128xbf16, #tpu.memory_space<vmem>>, vector<4x128xbf16>
    tpu.vector_store %arg13[%c12, %c0_12], %10 {strides = array<i32>} : memref<36x128xbf16, #tpu.memory_space<vmem>>, vector<4x128xbf16>,
    %c0_13 = arith.constant 0 : index
    %c0_14 = arith.constant 0 : index
    %c11 = arith.constant 11 : index
    %12 = vector.load %arg1[%c0_13, %c0_14, %c11] : memref<1x4x256xbf16, #tpu.memory_space<vmem>>, vector<1x4x128xbf16>
    %13 = vector.shape_cast %12 : vector<1x4x128xbf16> to vector<4x128xbf16>
    %c16 = arith.constant 16 : index
    %c0_15 = arith.constant 0 : index
    %14 = vector.load %arg13[%c16, %c0_15] : memref<36x128xbf16, #tpu.memory_space<vmem>>, vector<4x128xbf16>
    tpu.vector_store %arg13[%c16, %c0_15], %13 {strides = array<i32>} : memref<36x128xbf16, #tpu.memory_space<vmem>>, vector<4x128xbf16>,
    %c0_16 = arith.constant 0 : index
    %c0_17 = arith.constant 0 : index
    %c12_18 = arith.constant 12 : index
    %15 = vector.load %arg1[%c0_16, %c0_17, %c12_18] : memref<1x4x256xbf16, #tpu.memory_space<vmem>>, vector<1x4x128xbf16>
    %16 = vector.shape_cast %15 : vector<1x4x128xbf16> to vector<4x128xbf16>
    %c20 = arith.constant 20 : index
    %c0_19 = arith.constant 0 : index
    %17 = vector.load %arg13[%c20, %c0_19] : memref<36x128xbf16, #tpu.memory_space<vmem>>, vector<4x128xbf16>
    tpu.vector_store %arg13[%c20, %c0_19], %16 {strides = array<i32>} : memref<36x128xbf16, #tpu.memory_space<vmem>>, vector<4x128xbf16>,
    %c0_20 = arith.constant 0 : index
    %c0_21 = arith.constant 0 : index
    %c20_22 = arith.constant 20 : index
    %18 = vector.load %arg1[%c0_20, %c0_21, %c20_22] : memref<1x4x256xbf16, #tpu.memory_space<vmem>>, vector<1x4x128xbf16>
    %19 = vector.shape_cast %18 : vector<1x4x128xbf16> to vector<4x128xbf16>
    %c24 = arith.constant 24 : index
    %c0_23 = arith.constant 0 : index
    %20 = vector.load %arg13[%c24, %c0_23] : memref<36x128xbf16, #tpu.memory_space<vmem>>, vector<4x128xbf16>
    tpu.vector_store %arg13[%c24, %c0_23], %19 {strides = array<i32>} : memref<36x128xbf16, #tpu.memory_space<vmem>>, vector<4x128xbf16>,
    %c0_24 = arith.constant 0 : index
    %c0_25 = arith.constant 0 : index
    %c21 = arith.constant 21 : index
    %21 = vector.load %arg1[%c0_24, %c0_25, %c21] : memref<1x4x256xbf16, #tpu.memory_space<vmem>>, vector<1x4x128xbf16>
    %22 = vector.shape_cast %21 : vector<1x4x128xbf16> to vector<4x128xbf16>
    %c28 = arith.constant 28 : index
    %c0_26 = arith.constant 0 : index
    %23 = vector.load %arg13[%c28, %c0_26] : memref<36x128xbf16, #tpu.memory_space<vmem>>, vector<4x128xbf16>
    tpu.vector_store %arg13[%c28, %c0_26], %22 {strides = array<i32>} : memref<36x128xbf16, #tpu.memory_space<vmem>>, vector<4x128xbf16>,
    %c0_27 = arith.constant 0 : index
    %c0_28 = arith.constant 0 : index
    %c22 = arith.constant 22 : index
    %24 = vector.load %arg1[%c0_27, %c0_28, %c22] : memref<1x4x256xbf16, #tpu.memory_space<vmem>>, vector<1x4x128xbf16>
    %25 = vector.shape_cast %24 : vector<1x4x128xbf16> to vector<4x128xbf16>
    %c32 = arith.constant 32 : index
    %c0_29 = arith.constant 0 : index
    %26 = vector.load %arg13[%c32, %c0_29] : memref<36x128xbf16, #tpu.memory_space<vmem>>, vector<4x128xbf16>
    tpu.vector_store %arg13[%c32, %c0_29], %25 {strides = array<i32>} : memref<36x128xbf16, #tpu.memory_space<vmem>>, vector<4x128xbf16>,
    %c0_30 = arith.constant 0 : index
    %c0_31 = arith.constant 0 : index
    %27 = vector.load %arg2[%c0_30, %c0_31] : memref<32x36xbf16, #tpu.memory_space<vmem>>, vector<32x36xbf16>
    %c0_32 = arith.constant 0 : index
    %c0_33 = arith.constant 0 : index
    %28 = vector.load %arg13[%c0_32, %c0_33] : memref<36x128xbf16, #tpu.memory_space<vmem>>, vector<36x128xbf16>
    %cst = arith.constant dense<0.000000e+00> : vector<32x128xf32>
    %29 = tpu.matmul %27, %28, %cst {dimension_numbers = #tpu.dot_dimension_numbers<[1], [0], [0], [1], [0, 0, 1, 1], [], []>} : vector<32x36xbf16>, vector<36x128xbf16>, vector<32x128xf32> -> vector<32x128xf32>
    %c0_34 = arith.constant 0 : index
    %c0_35 = arith.constant 0 : index
    %30 = vector.load %arg3[%c0_34, %c0_35] : memref<32x1xf32, #tpu.memory_space<vmem>>, vector<32x1xf32>
    %31 = vector.broadcast %30 : vector<32x1xf32> to vector<32x128xf32>
    %32 = arith.addf %29, %31 : vector<32x128xf32>
    %c0_36 = arith.constant 0 : index
    %c0_37 = arith.constant 0 : index
    %33 = vector.load %arg10[%c0_36, %c0_37] : memref<1x128xf32, #tpu.memory_space<vmem>>, vector<1x128xf32>
    %c0_38 = arith.constant 0 : index
    %c0_39 = arith.constant 0 : index
    %34 = vector.load %arg4[%c0_38, %c0_39] : memref<32x1xf32, #tpu.memory_space<vmem>>, vector<32x1xf32>
    %c0_40 = arith.constant 0 : index
    %c0_41 = arith.constant 0 : index
    %35 = vector.load %arg5[%c0_40, %c0_41] : memref<32x1xf32, #tpu.memory_space<vmem>>, vector<32x1xf32>
    %36 = vector.broadcast %33 : vector<1x128xf32> to vector<32x128xf32>
    %37 = arith.mulf %32, %36 : vector<32x128xf32>
    %cst_42 = arith.constant dense<0.000000e+00> : vector<32xf32>
    %38 = vector.multi_reduction <add>, %37, %cst_42 [1] : vector<32x128xf32> to vector<32xf32>
    %39 = vector.shape_cast %38 : vector<32xf32> to vector<32x1xf32>
    %cst_43 = arith.constant 1.562500e-02 : f32
    %40 = vector.broadcast %cst_43 : f32 to vector<32x1xf32>
    %41 = arith.mulf %39, %40 : vector<32x1xf32>
    %42 = vector.broadcast %41 : vector<32x1xf32> to vector<32x128xf32>
    %43 = arith.subf %32, %42 : vector<32x128xf32>
    %44 = vector.broadcast %33 : vector<1x128xf32> to vector<32x128xf32>
    %45 = arith.mulf %43, %44 : vector<32x128xf32>
    %46 = arith.mulf %45, %45 : vector<32x128xf32>
    %cst_44 = arith.constant dense<0.000000e+00> : vector<32xf32>
    %47 = vector.multi_reduction <add>, %46, %cst_44 [1] : vector<32x128xf32> to vector<32xf32>
    %48 = vector.shape_cast %47 : vector<32xf32> to vector<32x1xf32>
    %cst_45 = arith.constant 1.562500e-02 : f32
    %49 = vector.broadcast %cst_45 : f32 to vector<32x1xf32>
    %50 = arith.mulf %48, %49 : vector<32x1xf32>
    %cst_46 = arith.constant 9.99999974E-6 : f32
    %51 = vector.broadcast %cst_46 : f32 to vector<32x1xf32>
    %52 = arith.addf %50, %51 : vector<32x1xf32>
    %53 = math.rsqrt %52 : vector<32x1xf32>
    %54 = vector.broadcast %53 : vector<32x1xf32> to vector<32x128xf32>
    %55 = arith.mulf %45, %54 : vector<32x128xf32>
    %56 = vector.broadcast %34 : vector<32x1xf32> to vector<32x128xf32>
    %57 = arith.mulf %55, %56 : vector<32x128xf32>
    %58 = vector.broadcast %35 : vector<32x1xf32> to vector<32x128xf32>
    %59 = arith.addf %57, %58 : vector<32x128xf32>
    %cst_47 = arith.constant 0.000000e+00 : f32
    %60 = vector.broadcast %cst_47 : f32 to vector<32x128xf32>
    %61 = arith.maximumf %59, %60 : vector<32x128xf32>
    %62 = vector.broadcast %33 : vector<1x128xf32> to vector<32x128xf32>
    %63 = arith.mulf %61, %62 : vector<32x128xf32>
    %64 = arith.truncf %63 : vector<32x128xf32> to vector<32x128xbf16>
    %c0_48 = arith.constant 0 : index
    %c0_49 = arith.constant 0 : index
    %65 = vector.load %arg14[%c0_48, %c0_49] : memref<32x256xbf16, #tpu.memory_space<vmem>>, vector<32x128xbf16>
    tpu.vector_store %arg14[%c0_48, %c0_49], %64 {strides = array<i32>} : memref<32x256xbf16, #tpu.memory_space<vmem>>, vector<32x128xbf16>,
    %cst_50 = arith.constant 0.000000e+00 : bf16
    %66 = vector.broadcast %cst_50 : bf16 to vector<32x128xbf16>
    %c0_51 = arith.constant 0 : index
    %c128 = arith.constant 128 : index
    %67 = vector.load %arg14[%c0_51, %c128] : memref<32x256xbf16, #tpu.memory_space<vmem>>, vector<32x128xbf16>
    tpu.vector_store %arg14[%c0_51, %c128], %66 {strides = array<i32>} : memref<32x256xbf16, #tpu.memory_space<vmem>>, vector<32x128xbf16>,
    %c0_52 = arith.constant 0 : index
    %c0_53 = arith.constant 0 : index
    %68 = vector.load %arg14[%c0_52, %c0_53] : memref<32x256xbf16, #tpu.memory_space<vmem>>, vector<32x128xbf16>
    %c0_54 = arith.constant 0 : index
    %c0_55 = arith.constant 0 : index
    %69 = vector.load %arg15[%c0_54, %c0_55] : memref<288x128xbf16, #tpu.memory_space<vmem>>, vector<32x128xbf16>
    tpu.vector_store %arg15[%c0_54, %c0_55], %68 {strides = array<i32>} : memref<288x128xbf16, #tpu.memory_space<vmem>>, vector<32x128xbf16>,
    %c0_56 = arith.constant 0 : index
    %c1_57 = arith.constant 1 : index
    %70 = vector.load %arg14[%c0_56, %c1_57] : memref<32x256xbf16, #tpu.memory_space<vmem>>, vector<32x128xbf16>
    %c32_58 = arith.constant 32 : index
    %c0_59 = arith.constant 0 : index
    %71 = vector.load %arg15[%c32_58, %c0_59] : memref<288x128xbf16, #tpu.memory_space<vmem>>, vector<32x128xbf16>
    tpu.vector_store %arg15[%c32_58, %c0_59], %70 {strides = array<i32>} : memref<288x128xbf16, #tpu.memory_space<vmem>>, vector<32x128xbf16>,
    %c0_60 = arith.constant 0 : index
    %c2_61 = arith.constant 2 : index
    %72 = vector.load %arg14[%c0_60, %c2_61] : memref<32x256xbf16, #tpu.memory_space<vmem>>, vector<32x128xbf16>
    %c64 = arith.constant 64 : index
    %c0_62 = arith.constant 0 : index
    %73 = vector.load %arg15[%c64, %c0_62] : memref<288x128xbf16, #tpu.memory_space<vmem>>, vector<32x128xbf16>
    tpu.vector_store %arg15[%c64, %c0_62], %72 {strides = array<i32>} : memref<288x128xbf16, #tpu.memory_space<vmem>>, vector<32x128xbf16>,
    %c0_63 = arith.constant 0 : index
    %c10_64 = arith.constant 10 : index
    %74 = vector.load %arg14[%c0_63, %c10_64] : memref<32x256xbf16, #tpu.memory_space<vmem>>, vector<32x128xbf16>
    %c96 = arith.constant 96 : index
    %c0_65 = arith.constant 0 : index
    %75 = vector.load %arg15[%c96, %c0_65] : memref<288x128xbf16, #tpu.memory_space<vmem>>, vector<32x128xbf16>
    tpu.vector_store %arg15[%c96, %c0_65], %74 {strides = array<i32>} : memref<288x128xbf16, #tpu.memory_space<vmem>>, vector<32x128xbf16>,
    %c0_66 = arith.constant 0 : index
    %c11_67 = arith.constant 11 : index
    %76 = vector.load %arg14[%c0_66, %c11_67] : memref<32x256xbf16, #tpu.memory_space<vmem>>, vector<32x128xbf16>
    %c128_68 = arith.constant 128 : index
    %c0_69 = arith.constant 0 : index
    %77 = vector.load %arg15[%c128_68, %c0_69] : memref<288x128xbf16, #tpu.memory_space<vmem>>, vector<32x128xbf16>
    tpu.vector_store %arg15[%c128_68, %c0_69], %76 {strides = array<i32>} : memref<288x128xbf16, #tpu.memory_space<vmem>>, vector<32x128xbf16>,
    %c0_70 = arith.constant 0 : index
    %c12_71 = arith.constant 12 : index
    %78 = vector.load %arg14[%c0_70, %c12_71] : memref<32x256xbf16, #tpu.memory_space<vmem>>, vector<32x128xbf16>
    %c160 = arith.constant 160 : index
    %c0_72 = arith.constant 0 : index
    %79 = vector.load %arg15[%c160, %c0_72] : memref<288x128xbf16, #tpu.memory_space<vmem>>, vector<32x128xbf16>
    tpu.vector_store %arg15[%c160, %c0_72], %78 {strides = array<i32>} : memref<288x128xbf16, #tpu.memory_space<vmem>>, vector<32x128xbf16>,
    %c0_73 = arith.constant 0 : index
    %c20_74 = arith.constant 20 : index
    %80 = vector.load %arg14[%c0_73, %c20_74] : memref<32x256xbf16, #tpu.memory_space<vmem>>, vector<32x128xbf16>
    %c192 = arith.constant 192 : index
    %c0_75 = arith.constant 0 : index
    %81 = vector.load %arg15[%c192, %c0_75] : memref<288x128xbf16, #tpu.memory_space<vmem>>, vector<32x128xbf16>
    tpu.vector_store %arg15[%c192, %c0_75], %80 {strides = array<i32>} : memref<288x128xbf16, #tpu.memory_space<vmem>>, vector<32x128xbf16>,
    %c0_76 = arith.constant 0 : index
    %c21_77 = arith.constant 21 : index
    %82 = vector.load %arg14[%c0_76, %c21_77] : memref<32x256xbf16, #tpu.memory_space<vmem>>, vector<32x128xbf16>
    %c224 = arith.constant 224 : index
    %c0_78 = arith.constant 0 : index
    %83 = vector.load %arg15[%c224, %c0_78] : memref<288x128xbf16, #tpu.memory_space<vmem>>, vector<32x128xbf16>
    tpu.vector_store %arg15[%c224, %c0_78], %82 {strides = array<i32>} : memref<288x128xbf16, #tpu.memory_space<vmem>>, vector<32x128xbf16>,
    %c0_79 = arith.constant 0 : index
    %c22_80 = arith.constant 22 : index
    %84 = vector.load %arg14[%c0_79, %c22_80] : memref<32x256xbf16, #tpu.memory_space<vmem>>, vector<32x128xbf16>
    %c256 = arith.constant 256 : index
    %c0_81 = arith.constant 0 : index
    %85 = vector.load %arg15[%c256, %c0_81] : memref<288x128xbf16, #tpu.memory_space<vmem>>, vector<32x128xbf16>
    tpu.vector_store %arg15[%c256, %c0_81], %84 {strides = array<i32>} : memref<288x128xbf16, #tpu.memory_space<vmem>>, vector<32x128xbf16>,
    %c0_82 = arith.constant 0 : index
    %c0_83 = arith.constant 0 : index
    %86 = vector.load %arg6[%c0_82, %c0_83] : memref<32x288xbf16, #tpu.memory_space<vmem>>, vector<32x288xbf16>
    %c0_84 = arith.constant 0 : index
    %c0_85 = arith.constant 0 : index
    %87 = vector.load %arg15[%c0_84, %c0_85] : memref<288x128xbf16, #tpu.memory_space<vmem>>, vector<288x128xbf16>
    %cst_86 = arith.constant dense<0.000000e+00> : vector<32x128xf32>
    %88 = tpu.matmul %86, %87, %cst_86 {dimension_numbers = #tpu.dot_dimension_numbers<[1], [0], [0], [1], [0, 0, 1, 1], [], []>} : vector<32x288xbf16>, vector<288x128xbf16>, vector<32x128xf32> -> vector<32x128xf32>
    %c0_87 = arith.constant 0 : index
    %c0_88 = arith.constant 0 : index
    %89 = vector.load %arg7[%c0_87, %c0_88] : memref<32x1xf32, #tpu.memory_space<vmem>>, vector<32x1xf32>
    %90 = vector.broadcast %89 : vector<32x1xf32> to vector<32x128xf32>
    %91 = arith.addf %88, %90 : vector<32x128xf32>
    %c0_89 = arith.constant 0 : index
    %c0_90 = arith.constant 0 : index
    %92 = vector.load %arg11[%c0_89, %c0_90] : memref<1x128xf32, #tpu.memory_space<vmem>>, vector<1x128xf32>
    %c0_91 = arith.constant 0 : index
    %c0_92 = arith.constant 0 : index
    %93 = vector.load %arg8[%c0_91, %c0_92] : memref<32x1xf32, #tpu.memory_space<vmem>>, vector<32x1xf32>
    %c0_93 = arith.constant 0 : index
    %c0_94 = arith.constant 0 : index
    %94 = vector.load %arg9[%c0_93, %c0_94] : memref<32x1xf32, #tpu.memory_space<vmem>>, vector<32x1xf32>
    %95 = vector.broadcast %92 : vector<1x128xf32> to vector<32x128xf32>
    %96 = arith.mulf %91, %95 : vector<32x128xf32>
    %cst_95 = arith.constant dense<0.000000e+00> : vector<32xf32>
    %97 = vector.multi_reduction <add>, %96, %cst_95 [1] : vector<32x128xf32> to vector<32xf32>
    %98 = vector.shape_cast %97 : vector<32xf32> to vector<32x1xf32>
    %cst_96 = arith.constant 1.562500e-02 : f32
    %99 = vector.broadcast %cst_96 : f32 to vector<32x1xf32>
    %100 = arith.mulf %98, %99 : vector<32x1xf32>
    %101 = vector.broadcast %100 : vector<32x1xf32> to vector<32x128xf32>
    %102 = arith.subf %91, %101 : vector<32x128xf32>
    %103 = vector.broadcast %92 : vector<1x128xf32> to vector<32x128xf32>
    %104 = arith.mulf %102, %103 : vector<32x128xf32>
    %105 = arith.mulf %104, %104 : vector<32x128xf32>
    %cst_97 = arith.constant dense<0.000000e+00> : vector<32xf32>
    %106 = vector.multi_reduction <add>, %105, %cst_97 [1] : vector<32x128xf32> to vector<32xf32>
    %107 = vector.shape_cast %106 : vector<32xf32> to vector<32x1xf32>
    %cst_98 = arith.constant 1.562500e-02 : f32
    %108 = vector.broadcast %cst_98 : f32 to vector<32x1xf32>
    %109 = arith.mulf %107, %108 : vector<32x1xf32>
    %cst_99 = arith.constant 9.99999974E-6 : f32
    %110 = vector.broadcast %cst_99 : f32 to vector<32x1xf32>
    %111 = arith.addf %109, %110 : vector<32x1xf32>
    %112 = math.rsqrt %111 : vector<32x1xf32>
    %113 = vector.broadcast %112 : vector<32x1xf32> to vector<32x128xf32>
    %114 = arith.mulf %104, %113 : vector<32x128xf32>
    %115 = vector.broadcast %93 : vector<32x1xf32> to vector<32x128xf32>
    %116 = arith.mulf %114, %115 : vector<32x128xf32>
    %117 = vector.broadcast %94 : vector<32x1xf32> to vector<32x128xf32>
    %118 = arith.addf %116, %117 : vector<32x128xf32>
    %cst_100 = arith.constant 0.000000e+00 : f32
    %119 = vector.broadcast %cst_100 : f32 to vector<32x128xf32>
    %120 = arith.maximumf %118, %119 : vector<32x128xf32>
    %121 = vector.broadcast %92 : vector<1x128xf32> to vector<32x128xf32>
    %122 = arith.mulf %120, %121 : vector<32x128xf32>
    %c0_101 = arith.constant 0 : index
    %c0_102 = arith.constant 0 : index
    %c0_103 = arith.constant 0 : index
    %123 = vector.load %arg12[%c0_101, %c0_102, %c0_103] : memref<1x32x128xf32, #tpu.memory_space<vmem>>, vector<1x32x128xf32>
    %124 = vector.shape_cast %123 : vector<1x32x128xf32> to vector<32x128xf32>
    %125 = vector.shape_cast %122 : vector<32x128xf32> to vector<1x32x128xf32>
    tpu.vector_store %arg12[%c0_101, %c0_102, %c0_103], %125 {strides = array<i32>} : memref<1x32x128xf32, #tpu.memory_space<vmem>>, vector<1x32x128xf32>,
    return
  }
  func.func @transform_0(%arg0: i32) -> (i32, i32, i32) {
    %c0_i32 = arith.constant 0 : i32
    %c0_i32_0 = arith.constant 0 : i32
    %c0_i32_1 = arith.constant 0 : i32
    return %arg0, %c0_i32, %c0_i32_0 : i32, i32, i32
  }
  func.func @transform_1(%arg0: i32) -> (i32, i32) {
    %c0_i32 = arith.constant 0 : i32
    %c0_i32_0 = arith.constant 0 : i32
    %c0_i32_1 = arith.constant 0 : i32
    return %c0_i32, %c0_i32_0 : i32, i32
  }
  func.func @transform_2(%arg0: i32) -> (i32, i32) {
    %c0_i32 = arith.constant 0 : i32
    %c0_i32_0 = arith.constant 0 : i32
    %c0_i32_1 = arith.constant 0 : i32
    return %c0_i32, %c0_i32_0 : i32, i32
  }
  func.func @transform_3(%arg0: i32) -> (i32, i32) {
    %c0_i32 = arith.constant 0 : i32
    %c0_i32_0 = arith.constant 0 : i32
    %c0_i32_1 = arith.constant 0 : i32
    return %c0_i32, %c0_i32_0 : i32, i32
  }
  func.func @transform_4(%arg0: i32) -> (i32, i32) {
    %c0_i32 = arith.constant 0 : i32
    %c0_i32_0 = arith.constant 0 : i32
    %c0_i32_1 = arith.constant 0 : i32
    return %c0_i32, %c0_i32_0 : i32, i32
  }
  func.func @transform_5(%arg0: i32) -> (i32, i32) {
    %c0_i32 = arith.constant 0 : i32
    %c0_i32_0 = arith.constant 0 : i32
    %c0_i32_1 = arith.constant 0 : i32
    return %c0_i32, %c0_i32_0 : i32, i32
  }
  func.func @transform_6(%arg0: i32) -> (i32, i32) {
    %c0_i32 = arith.constant 0 : i32
    %c0_i32_0 = arith.constant 0 : i32
    %c0_i32_1 = arith.constant 0 : i32
    return %c0_i32, %c0_i32_0 : i32, i32
  }
  func.func @transform_7(%arg0: i32) -> (i32, i32) {
    %c0_i32 = arith.constant 0 : i32
    %c0_i32_0 = arith.constant 0 : i32
    %c0_i32_1 = arith.constant 0 : i32
    return %c0_i32, %c0_i32_0 : i32, i32
  }
  func.func @transform_8(%arg0: i32) -> (i32, i32) {
    %c0_i32 = arith.constant 0 : i32
    %c0_i32_0 = arith.constant 0 : i32
    %c0_i32_1 = arith.constant 0 : i32
    return %c0_i32, %c0_i32_0 : i32, i32
  }
  func.func @transform_9(%arg0: i32) -> (i32, i32) {
    %c0_i32 = arith.constant 0 : i32
    %c0_i32_0 = arith.constant 0 : i32
    %c0_i32_1 = arith.constant 0 : i32
    return %c0_i32, %c0_i32_0 : i32, i32
  }
  func.func @transform_10(%arg0: i32) -> (i32, i32) {
    %c0_i32 = arith.constant 0 : i32
    %c0_i32_0 = arith.constant 0 : i32
    %c0_i32_1 = arith.constant 0 : i32
    return %c0_i32, %c0_i32_0 : i32, i32
  }
  func.func @transform_11(%arg0: i32) -> (i32, i32, i32) {
    %c0_i32 = arith.constant 0 : i32
    %c0_i32_0 = arith.constant 0 : i32
    %c0_i32_1 = arith.constant 0 : i32
    return %arg0, %c0_i32, %c0_i32_0 : i32, i32, i32
  }
}

</mosaic_0001>

<bundles_post_ra>
// kernel: down_forward.1
= control target key start
LH: loop header
LB: loop body
LE: loop exit
PB: predicated region body
PF: predicated region fallthrough
CT: control target
= control target key end

     0   :  { %s1567_s17 = smov 0   ;;  %s1792_s0 = inlined_call_operand.vmem [shape: bf16[2,4,256], index: 0, kind: input, shape index: {}]   ;;  %s1793_s1 = inlined_call_operand.vmem [shape: bf16[32,36], index: 1, kind: input, shape index: {}]   ;;  %s1794_s2 = inlined_call_operand.vmem [shape: f32[32,1], index: 2, kind: input, shape index: {}]   ;;  %s1795_s3 = inlined_call_operand.vmem [shape: f32[32,1], index: 3, kind: input, shape index: {}]   ;;  %s1796_s4 = inlined_call_operand.vmem [shape: f32[32,1], index: 4, kind: input, shape index: {}]   ;;  %s1797_s5 = inlined_call_operand.vmem [shape: bf16[32,288], index: 5, kind: input, shape index: {}]   ;;  %s1798_s6 = inlined_call_operand.vmem [shape: f32[32,1], index: 6, kind: input, shape index: {}]   ;;  %s1799_s7 = inlined_call_operand.vmem [shape: f32[32,1], index: 7, kind: input, shape index: {}]   ;;  %s1800_s8 = inlined_call_operand.vmem [shape: f32[32,1], index: 8, kind: input, shape index: {}]   ;;  %s1801_s9 = inlined_call_operand.vmem [shape: f32[1,128], index: 9, kind: input, shape index: {}]   ;;  %s1802_s10 = inlined_call_operand.vmem [shape: f32[1,128], index: 10, kind: input, shape index: {}]   ;;  %s1803_s11 = inlined_call_operand.vmem [shape: f32[2,32,128], index: 11, kind: output, shape index: {}]  }
   0x1 LB: > { %s1316_s18 = sadd.s32 4294967295, %s1495_s17   ;;  %p1320_p0 = scmp.ge.s32.totalorder %s1495_s17, 1  ;;  %s1495_s17 = sphi %s1567_s17, %s21_s17  }
   0x2   : > { %p337_p1 = scmp.lt.s32.totalorder %s1495_s17, 3 }
   0x4   : > { %p338_p2 = pnand %p1320_p0, %p337_p1 }
   0x5   : > { %p377_p3 = scmp.lt.s32.totalorder (!%p338_p2), %s1316_s18, 1  ;;  %v396_v0 = vlaneseq (!%p338_p2)  ;;  %v1497_v1 = vmov (!%p338_p2), 1983009808   ;;  %s1498_s23 = smov (!%p338_p2), 117   ;;  %v1463_v16 = vld [vmem:[%s1793_s1] sm:$0xff] (!%p338_p2)   ;;  %vm580_vm0 = vcmask (!%p338_p2), 293888  }
   0x6   : > { %341 = sbr.rel (%p338_p2) target bundleno = 1411 (0x583), region = 64  ;;  %v394_v2 = vunpack.c.l.s4 (!%p338_p2), %v1497_v1  ;;  %s1499_s24 = smov (!%p338_p2), 126   ;;  %1393 = vmatprep.mubr.msk.bf16.mxu0 (!%p338_p2), %vm580_vm0, %v1463_v16  ;;  %v532_v17 = vld [vmem:[%s1794_s2 + $0x8] sm:$0xff] (!%p338_p2)  ;;  %v531_v18 = vld [vmem:[%s1794_s2] sm:$0xff] (!%p338_p2)  ;;  %v1506_v19 = vmov (!%p338_p2), 0   ;;  %v533_v20 = vld [vmem:[%s1794_s2 + $0x10] sm:$0xff] (!%p338_p2) }
   0x7   : > { %v397_v3 = vshrl.u32 (!%p338_p2), %v396_v0, 7  ;;  %s1500_s25 = smov (!%p338_p2), 118   ;;  %s1501_s26 = smov (!%p338_p2), 127   ;;  %1425 = vset.pattern.permute.xlu1 (!%p338_p2), %v1506_v19  ;;  %1424 = vset.pattern.permute.xlu0 (!%p338_p2), %v1506_v19  ;;  %v534_v21 = vld [vmem:[%s1794_s2 + $0x18] sm:$0xff] (!%p338_p2)  ;;  %vm452_vm1 = vcmask (!%p338_p2), 957440   ;;  %vm419_vm2 = vcmask (!%p338_p2), 1031168  }
   0x8   : > { %v395_v4 = vunpack.c.0.s8 (!%p338_p2), %v394_v2  ;;  %s1502_s27 = smov (!%p338_p2), 108   ;;  %s1503_s28 = smov (!%p338_p2), 116   ;;  %vm436_vm3 = vcmask (!%p338_p2), 965632   ;;  %vm403_vm4 = vcmask (!%p338_p2), 1039360   ;;  %vm485_vm5 = vcmask (!%p338_p2), 883712   ;;  %v1464_v50 = vld [vmem:[%s1793_s1 + $0x8] sm:$0xff] (!%p338_p2)  }
   0x9   : > { %s1804_s29 = smov (!%p338_p2), 106   ;;  %s1505_s30 = smov (!%p338_p2), 107   ;;  %vm469_vm6 = vcmask (!%p338_p2), 949248   ;;  %vm518_vm7 = vcmask (!%p338_p2), 867328   ;;  %vm502_vm8 = vcmask (!%p338_p2), 875520   ;;  %vm587_vm9 = vcmask (!%p338_p2), 1041408  }
   0xa   : > { %v398_v5 = vsub.s32 (!%p338_p2), %v395_v4, %v397_v3  ;;  %v1622_v56 = vld [vmem:[%s1801_s9] ss:$0 sm:$0xff] (!%p338_p2)  ;;  %v642_v4 = vld [vmem:[%s1795_s3 + $0x8] sm:$0xff] (!%p338_p2)  ;;  %vm1029_vm10 = vcmask (!%p338_p2), 261120  }
   0xd   : > { %s1808_s18 = smov (!%p377_p3, %s1316_s18), 1 }
   0xe   : > { %s1348_s19 = sshll.u32 %s1808_s18, 2 }
   0xf   : > { %s381_s22 = scalar_lea.vmem %s1792_s0, %s1348_s19 }
  0x10   : > { %v1326_v6 = vld.sshfl [vmem:[%s381_s22] sm:$0x33 pattern:$0x76325410] }
  0x11   : > { %449 = vrot.lane.b32.xlu1 %v1326_v6, %s1498_s23  ;;  %416 = vrot.lane.b32.xlu0 %v1326_v6, %s1499_s24  ;;  %v1456_v7 = vld [vmem:[%s381_s22] ss:$0 sps:$4 sm:$0xff]  }
  0x12   : > { %v1457_v8 = vld [vmem:[%s381_s22] ss:$0 sps:$4 sm:$0xff]   ;;  %v432_v10 = vrot.slane %v1456_v7, %v398_v5  ;;  %v643_v7 = vld [vmem:[%s1795_s3 + $0x10] sm:$0xff] }
  0x13   : > { %v1458_v9 = vld [vmem:[%s381_s22] ss:$0 sps:$4 sm:$0xff]   ;;  %v399_v11 = vrot.slane %v1457_v8, %v398_v5  ;;  %v646_v8 = vld [vmem:[%s1796_s4 + $0x8] sm:$0xff] }
  0x14   : > { %v388_v12 = vld [vmem:[%s381_s22] sm:$0x3]  ;;  %v465_v13 = vrot.slane %v1458_v9, %v398_v5  ;;  %v644_v9 = vld [vmem:[%s1795_s3 + $0x18] sm:$0xff] }
  0x15   : > { %433 = vrot.lane.b32.xlu1 %v432_v10, %s1500_s25  ;;  %389 = vst [vmem:[#allocation2] sm:$0x3] %v388_v12  ;;  %400 = vrot.lane.b32.xlu0 %v399_v11, %s1501_s26  ;;  %v1459_v14 = vld [vmem:[%s381_s22] ss:$0 sps:$4 sm:$0xff]  }
  0x16   : > { %v498_v15 = vrot.slane %v1459_v14, %v398_v5  ;;  %v645_v5 = vld [vmem:[%s1796_s4] sm:$0xff] }
  0x19   : > { %482 = vrot.lane.b32.xlu1 %v1326_v6, %s1502_s27  ;;  %466 = vrot.lane.b32.xlu0 %v465_v13, %s1503_s28 }
  0x1d   : > { %515 = vrot.lane.b32.xlu1 %v1326_v6, %s1804_s29  ;;  %499 = vrot.lane.b32.xlu0 %v498_v15, %s1505_s30  ;;  %v641_v6 = vld [vmem:[%s1795_s3] sm:$0xff] }
  0x21   : > { %542 = vperm.xlu1 %1425, %v532_v17   ;;  %537 = vperm.xlu0 %1424, %v531_v18  }
  0x25   : > { %547 = vperm.xlu1 %1425, %v533_v20   ;;  %552 = vperm.xlu0 %1424, %v534_v21  }
  0x83   : > { %v450_v22 = vpop.permute.xlu1 %449  ;;  %v417_v23 = vpop.permute.xlu0 %416 }
  0x84   : > { %v451_v24 = vrot.slane %v450_v22, 4  ;;  %v418_v25 = vrot.slane %v417_v23, 4 }
  0x86   : > { %v453_v26 = vsel %vm452_vm1, %v450_v22, %v451_v24  ;;  %v420_v27 = vsel %vm419_vm2, %v417_v23, %v418_v25 }
  0x87   : > { %455 = vst [vmem:[#allocation2 + $0x8] sm:$0x3] %v453_v26  ;;  %422 = vst [vmem:[#allocation2 + $0x4] sm:$0x3] %v420_v27  ;;  %v434_v28 = vpop.permute.xlu1 %433  ;;  %v401_v30 = vpop.permute.xlu0 %400 }
  0x88   : > { %v435_v29 = vrot.slane %v434_v28, 4  ;;  %v402_v31 = vrot.slane %v401_v30, 4 }
  0x8a   : > { %v437_v32 = vsel %vm436_vm3, %v434_v28, %v435_v29  ;;  %v404_v33 = vsel %vm403_vm4, %v401_v30, %v402_v31  ;;  %v647_v31 = vld [vmem:[%s1796_s4 + $0x10] sm:$0xff] }
  0x8b   : > { %439 = vst [vmem:[#allocation2 + $0x4] sm:$0xc] %v437_v32  ;;  %v483_v34 = vpop.permute.xlu1 %482  ;;  %406 = vst [vmem:[#allocation2] sm:$0xc] %v404_v33  ;;  %v467_v35 = vpop.permute.xlu0 %466  ;;  %v648_v32 = vld [vmem:[%s1796_s4 + $0x18] sm:$0xff] }
  0x8c   : > { %v484_v36 = vrot.slane %v483_v34, 4  ;;  %v468_v37 = vrot.slane %v467_v35, 4 }
  0x8e   : > { %v486_v38 = vsel %vm485_vm5, %v483_v34, %v484_v36  ;;  %v470_v39 = vsel %vm469_vm6, %v467_v35, %v468_v37 }
  0x8f   : > { %488 = vst [vmem:[#allocation2 + $0xc] sm:$0x3] %v486_v38  ;;  %v516_v40 = vpop.permute.xlu1 %515  ;;  %472 = vst [vmem:[#allocation2 + $0x8] sm:$0xc] %v470_v39  ;;  %v500_v41 = vpop.permute.xlu0 %499 }
  0x90   : > { %v517_v42 = vrot.slane %v516_v40, 4  ;;  %v501_v43 = vrot.slane %v500_v41, 4 }
  0x92   : > { %v519_v44 = vsel %vm518_vm7, %v516_v40, %v517_v42  ;;  %v503_v45 = vsel %vm502_vm8, %v500_v41, %v501_v43  ;;  %v1460_v46 = vld [vmem:[#allocation2] sm:$0xff]  }
  0x93   : > { %521 = vst [vmem:[#allocation2 + $0x10] sm:$0x3] %v519_v44  ;;  %505 = vst [vmem:[#allocation2 + $0xc] sm:$0xc] %v503_v45  ;;  %1387 = vmatprep.subr.bf16.mxu0 %v1460_v46 }
  0x94   : > { %1388 = vmatpush3.bf16.msra.mxu0 %v1460_v46 }
  0x9a   : > { %v1461_v47 = vld [vmem:[#allocation2 + $0x8] sm:$0xff]   ;;  %v1462_v48 = vld [vmem:[#allocation2 + $0x10] ss:$0 sps:$4 sm:$0x33]  }
  0x9b   : > { %1389 = vmatprep.subr.bf16.mxu0 %v1461_v47  ;;  %v589_v49 = vsel %vm587_vm9, %v1462_v48, 0 }
  0x9c   : > { %1390 = vmatpush3.bf16.msra.mxu0 %v1461_v47 }
  0x9d   : > { %1405 = vmatprep.subr.msk.bf16.mxu0 %vm587_vm9, %v1462_v48 }
  0xa0   : > { %1392 = vmatpush3.bf16.msra.mxu0 %v589_v49  ;;  %v538_v51 = vpop.permute.xlu0 %537  ;;  %v543_v52 = vpop.permute.xlu1 %542 }
  0xa3   : > { %1394 = vmatmul.mubr.msk.bf16.vlgmr.msra.gmra.mrb[0].mxu0 %vm580_vm0, %v1464_v50 }
  0xa4   : > { %v553_v55 = vpop.permute.xlu0 %552  ;;  %v548_v59 = vpop.permute.xlu1 %547 }
 0x176   : > { %v1395_v53 = vpop.f32.mrb[0].mxu0 }
 0x177   : > { %v625_v54 = vpop.f32.mrb[1].mxu0  ;;  %v634_v0 = vadd.f32 %v1395_v53, %v548_v59 }
 0x178   : > { %v626_v57 = vadd.f32 %v625_v54, %v538_v51  ;;  %v1396_v58 = vpop.f32.mrb[2].mxu0 }
 0x179   : > { %v628_v60 = vpop.f32.mrb[3].mxu0  ;;  %v637_v61 = vadd.f32 %v1396_v58, %v553_v55  ;;  %v657_v3 = vmul.f32 %v1622_v56, %v634_v0 }
 0x17a   : > { %v629_v62 = vadd.f32 %v628_v60, %v543_v52  ;;  %v655_v63 = vmul.f32 %v1622_v56, %v626_v57 }
 0x17b   : > { %v658_v2 = vmul.f32 %v1622_v56, %v637_v61 }
 0x17c   : > { %659 = vadd.xlane.f32.xlu1 %v655_v63  ;;  %v656_v1 = vmul.f32 %v1622_v56, %v629_v62 }
 0x17e   : > { %661 = vadd.xlane.f32.xlu0 %v656_v1 }
 0x180   : > { %665 = vadd.xlane.f32.xlu1 %v658_v2 }
 0x182   : > { %663 = vadd.xlane.f32.xlu0 %v657_v3 }
 0x191   : > { %714 = vperm.xlu1 %1425, %v642_v4  }
 0x195   : > { %733 = vperm.xlu1 %1425, %v645_v5  }
 0x198   : > { %709 = vperm.xlu0 %1424, %v641_v6  }
 0x199   : > { %719 = vperm.xlu1 %1425, %v643_v7  }
 0x19c   : > { %738 = vperm.xlu0 %1424, %v646_v8  }
 0x1a0   : > { %724 = vperm.xlu0 %1424, %v644_v9  }
 0x209   : > { %v660_v10 = vpop.xlane.xlu1 %659 }
 0x20a   : > { %v667_v14 = vmul.f32 0.015625, %v660_v10 }
 0x20b   : > { %v662_v11 = vpop.xlane.xlu0 %661 }
 0x20c   : > { %v668_v12 = vmul.f32 0.015625, %v662_v11  ;;  %v671_v21 = vsub.f32 %v626_v57, %v667_v14 }
 0x20d   : > { %v666_v13 = vpop.xlane.xlu1 %665 }
 0x20e   : > { %v670_v15 = vmul.f32 0.015625, %v666_v13  ;;  %v672_v17 = vsub.f32 %v629_v62, %v668_v12  ;;  %v675_v28 = vmul.f32 %v1622_v56, %v671_v21 }
 0x20f   : > { %v664_v16 = vpop.xlane.xlu0 %663 }
 0x210   : > { %v674_v18 = vsub.f32 %v637_v61, %v670_v15  ;;  %v669_v20 = vmul.f32 0.015625, %v664_v16  ;;  %v676_v26 = vmul.f32 %v1622_v56, %v672_v17  ;;  %v679_v30 = vmul.f32 %v675_v28, %v675_v28  ;;  %v1471_v16 = vld [vmem:[%s1797_s5 + $0x8] ss:$12 sps:$4 sm:$0xff]  }
 0x211   : > { %v715_v33 = vpop.permute.xlu1 %714  ;;  %1401 = vmatprep.mubr.msk.bf16.mxu0 %vm1029_vm10, %v1471_v16  ;;  %v976_v17 = vld [vmem:[%s1798_s6 + $0x8] sm:$0xff] }
 0x212   : > { %v673_v22 = vsub.f32 %v634_v0, %v669_v20  ;;  %v678_v23 = vmul.f32 %v1622_v56, %v674_v18  ;;  %v680_v29 = vmul.f32 %v676_v26, %v676_v26  ;;  %v975_v18 = vld [vmem:[%s1798_s6] sm:$0xff]  ;;  %v978_v20 = vld [vmem:[%s1798_s6 + $0x18] sm:$0xff] }
 0x214   : > { %v682_v24 = vmul.f32 %v678_v23, %v678_v23  ;;  %v677_v25 = vmul.f32 %v1622_v56, %v673_v22 }
 0x215   : > { %v734_v35 = vpop.permute.xlu1 %733 }
 0x216   : > { %689 = vadd.xlane.f32.xlu1 %v682_v24  ;;  %v681_v27 = vmul.f32 %v677_v25, %v677_v25 }
 0x217   : > { %v710_v34 = vpop.permute.xlu0 %709 }
 0x218   : > { %687 = vadd.xlane.f32.xlu0 %v681_v27 }
 0x219   : > { %v720_v37 = vpop.permute.xlu1 %719 }
 0x21a   : > { %685 = vadd.xlane.f32.xlu1 %v680_v29 }
 0x21b   : > { %v739_v36 = vpop.permute.xlu0 %738 }
 0x21c   : > { %683 = vadd.xlane.f32.xlu0 %v679_v30 }
 0x21f   : > { %v725_v38 = vpop.permute.xlu0 %724 }
 0x22b   : > { %743 = vperm.xlu1 %1425, %v647_v31  }
 0x22f   : > { %1432 = vrot.lane.b32.xlu1 %v1506_v19, %s1503_s28 }
 0x232   : > { %748 = vperm.xlu0 %1424, %v648_v32  }
 0x236   : > { %1427 = vrot.lane.b32.xlu0 %v1506_v19, %s1498_s23 }
 0x2a3   : > { %v690_v39 = vpop.xlane.xlu1 %689 }
 0x2a4   : > { %v694_v40 = vmul.f32 0.015625, %v690_v39 }
 0x2a5   : > { %v688_v41 = vpop.xlane.xlu0 %687 }
 0x2a6   : > { %v698_v42 = vadd.f32 1e-05, %v694_v40  ;;  %v693_v43 = vmul.f32 0.015625, %v688_v41 }
 0x2a7   : > { %v686_v44 = vpop.xlane.xlu1 %685 }
 0x2a8   : > { %1473 = vrsqrt.f32 %v698_v42  ;;  %v697_v45 = vadd.f32 1e-05, %v693_v43  ;;  %v692_v46 = vmul.f32 0.015625, %v686_v44 }
 0x2a9   : > { %v684_v47 = vpop.xlane.xlu0 %683 }
 0x2aa   : > { %1475 = vrsqrt.f32 %v697_v45  ;;  %v696_v48 = vadd.f32 1e-05, %v692_v46  ;;  %v691_v49 = vmul.f32 0.015625, %v684_v47 }
 0x2ab   : > { %v744_v63 = vpop.permute.xlu1 %743 }
 0x2ac   : > { %1477 = vrsqrt.f32 %v696_v48  ;;  %v695_v50 = vadd.f32 1e-05, %v691_v49 }
 0x2ae   : > { %1479 = vrsqrt.f32 %v695_v50 }
 0x2af   : > { %v1433_v22 = vpop.permute.xlu1 %1432 }
 0x2b1   : > { %v749_v58 = vpop.permute.xlu0 %748 }
 0x2b2   : > { %v1474_v51 = vpop.eup %1473 }
 0x2b3   : > { %v706_v52 = vmul.f32 %v1474_v51, %v678_v23 }
 0x2b4   : > { %v1476_v53 = vpop.eup %1475 }
 0x2b5   : > { %v705_v54 = vmul.f32 %v1476_v53, %v677_v25  ;;  %v730_v55 = vmul.f32 %v725_v38, %v706_v52  ;;  %v1428_v21 = vpop.permute.xlu0 %1427  ;;  %v1435_v38 = vunpack.i.h.bf16 %v1433_v22 }
 0x2b6   : > { %v1478_v57 = vpop.eup %1477  ;;  %v1429_v25 = vunpack.i.l.bf16 %v1428_v21 }
 0x2b7   : > { %v704_v59 = vmul.f32 %v1478_v57, %v676_v26  ;;  %v729_v60 = vmul.f32 %v720_v37, %v705_v54  ;;  %v754_v61 = vadd.f32 %v749_v58, %v730_v55 }
 0x2b8   : > { %v1480_v62 = vpop.eup %1479 }
 0x2b9   : > { %v728_v0 = vmul.f32 %v715_v33, %v704_v59  ;;  %v703_v1 = vmul.f32 %v1480_v62, %v675_v28  ;;  %v753_v2 = vadd.f32 %v744_v63, %v729_v60  ;;  %v758_v3 = vmax.f32 %v754_v61, 0.0 }
 0x2ba   : > { %v1430_v28 = vunpack.i.h.bf16 %v1428_v21  ;;  %v1434_v33 = vunpack.i.l.bf16 %v1433_v22 }
 0x2bb   : > { %v752_v4 = vadd.f32 %v739_v36, %v728_v0  ;;  %v727_v5 = vmul.f32 %v710_v34, %v703_v1  ;;  %v757_v6 = vmax.f32 %v753_v2, 0.0  ;;  %v762_v10 = vmul.f32 %v1622_v56, %v758_v3 }
 0x2bd   : > { %v756_v7 = vmax.f32 %v752_v4, 0.0  ;;  %v751_v8 = vadd.f32 %v734_v35, %v727_v5  ;;  %v761_v9 = vmul.f32 %v1622_v56, %v757_v6  ;;  %v1465_v6 = vld [vmem:[%s1797_s5] ss:$12 sps:$4 sm:$0xff]  }
 0x2bf   : > { %v755_v11 = vmax.f32 %v751_v8, 0.0  ;;  %v764_v12 = vpack.c.bf16 %v762_v10, %v761_v9  ;;  %v760_v13 = vmul.f32 %v1622_v56, %v756_v7  ;;  %v1468_v7 = vld [vmem:[%s1797_s5 + $0x1c] ss:$12 sps:$4 sm:$0xff]  }
 0x2c1   : > { %v759_v14 = vmul.f32 %v1622_v56, %v755_v11  ;;  %873 = vrot.lane.b32.xlu0 %v764_v12, %s1503_s28  ;;  %851 = vrot.lane.b32.xlu1 %v764_v12, %s1498_s23  ;;  %v1467_v56 = vld [vmem:[%s1797_s5 + $0x4] ss:$12 sps:$4 sm:$0xff]  }
 0x2c2   : > { %1068 = vmatprep.mubr.bf16.mxu1 %v1467_v56 }
 0x2c3   : > { %v763_v15 = vpack.c.bf16 %v760_v13, %v759_v14  ;;  %v1470_v14 = vld [vmem:[%s1797_s5 + $0x18] ss:$12 sps:$4 sm:$0xff]  }
 0x2c5   : > { %895 = vrot.lane.b32.xlu0 %v764_v12, %s1502_s27  ;;  %847 = vrot.lane.b32.xlu1 %v763_v15, %s1498_s23 }
 0x2c9   : > { %917 = vrot.lane.b32.xlu0 %v764_v12, %s1505_s30  ;;  %1437 = vrot.lane.b32.xlu1 %v1506_v19, %s1501_s26 }
 0x2cd   : > { %869 = vrot.lane.b32.xlu0 %v763_v15, %s1503_s28  ;;  %785 = vrot.lane.b32.xlu1 %v764_v12, %s1501_s26  ;;  %s1349_s28 = sshll.u32 %s1808_s18, 5 }
 0x2ce   : > { %s386_s15 = scalar_lea.vmem %s1803_s11, %s1349_s28 }
 0x2d1   : > { %781 = vrot.lane.b32.xlu0 %v763_v15, %s1501_s26  ;;  %1442 = vrot.lane.b32.xlu1 %v1506_v19, %s1502_s27 }
 0x2d5   : > { %891 = vrot.lane.b32.xlu0 %v763_v15, %s1502_s27  ;;  %1447 = vrot.lane.b32.xlu1 %v1506_v19, %s1499_s24 }
 0x2d9   : > { %803 = vrot.lane.b32.xlu0 %v763_v15, %s1499_s24  ;;  %807 = vrot.lane.b32.xlu1 %v764_v12, %s1499_s24  ;;  %s1806_s24 = smov 106  }
 0x2dd   : > { %913 = vrot.lane.b32.xlu0 %v763_v15, %s1505_s30  ;;  %1452 = vrot.lane.b32.xlu1 %v1506_v19, %s1505_s30 }
 0x2e1   : > { %825 = vrot.lane.b32.xlu0 %v763_v15, %s1500_s25  ;;  %827 = vrot.lane.b32.xlu1 %v1506_v19, %s1500_s25 }
 0x2e5   : > { %831 = vrot.lane.b32.xlu0 %v1506_v19, %s1500_s25  ;;  %829 = vrot.lane.b32.xlu1 %v764_v12, %s1500_s25 }
 0x2e9   : > { %937 = vrot.lane.b32.xlu0 %v1506_v19, %s1806_s24  ;;  %935 = vrot.lane.b32.xlu1 %v763_v15, %s1806_s24 }
 0x2ed   : > { %941 = vrot.lane.b32.xlu0 %v1506_v19, %s1806_s24  ;;  %939 = vrot.lane.b32.xlu1 %v764_v12, %s1806_s24  ;;  %v977_v19 = vld [vmem:[%s1798_s6 + $0x10] sm:$0xff] }
 0x2f1   : > { %986 = vperm.xlu0 %1424, %v976_v17   ;;  %981 = vperm.xlu1 %1425, %v975_v18  }
 0x2f5   : > { %996 = vperm.xlu0 %1424, %v978_v20   ;;  %991 = vperm.xlu1 %1425, %v977_v19  }
 0x333   : > { %v874_v23 = vpop.permute.xlu0 %873  ;;  %v852_v24 = vpop.permute.xlu1 %851 }
 0x334   : > { %v856_v30 = vsel %vm452_vm1, %v852_v24, %v1430_v28  ;;  %v878_v42 = vsel %vm469_vm6, %v874_v23, %v1435_v38 }
 0x337   : > { %v896_v26 = vpop.permute.xlu0 %895  ;;  %v848_v27 = vpop.permute.xlu1 %847 }
 0x338   : > { %v855_v29 = vsel %vm452_vm1, %v848_v27, %v1429_v25 }
 0x339   : > { %1355 = vmatprep.subr.bf16.mxu1 %v855_v29 }
 0x33a   : > { %1356 = vmatpush3.bf16.msra.mxu1 %v763_v15  ;;  %v1472_v15 = vld [vmem:[%s1797_s5 + $0x20] ss:$12 sps:$4 sm:$0xff]  }
 0x33b   : > { %v918_v31 = vpop.permute.xlu0 %917  ;;  %1357 = vmatprep.subr.bf16.mxu1 %v856_v30  ;;  %v1438_v32 = vpop.permute.xlu1 %1437 }
 0x33c   : > { %v1439_v37 = vunpack.i.l.bf16 %v1438_v32  ;;  %v1440_v43 = vunpack.i.h.bf16 %v1438_v32 }
 0x33e   : > { %1358 = vmatpush3.bf16.msra.mxu1 %v764_v12 }
 0x33f   : > { %v870_v34 = vpop.permute.xlu0 %869  ;;  %v786_v35 = vpop.permute.xlu1 %785 }
 0x340   : > { %v877_v36 = vsel %vm469_vm6, %v870_v34, %v1434_v33  ;;  %v790_v47 = vsel %vm403_vm4, %v786_v35, %v1440_v43 }
 0x341   : > { %1359 = vmatprep.subr.bf16.mxu1 %v877_v36 }
 0x343   : > { %v782_v39 = vpop.permute.xlu0 %781  ;;  %v1443_v40 = vpop.permute.xlu1 %1442 }
 0x344   : > { %v789_v41 = vsel %vm403_vm4, %v782_v39, %v1439_v37  ;;  %v1444_v44 = vunpack.i.l.bf16 %v1443_v40  ;;  %v1445_v49 = vunpack.i.h.bf16 %v1443_v40 }
 0x345   : > { %1360 = vmatpush3.bf16.msra.mxu1 %v789_v41 }
 0x346   : > { %1361 = vmatprep.subr.bf16.mxu1 %v878_v42  ;;  %v900_v54 = vsel %vm485_vm5, %v896_v26, %v1445_v49  ;;  %v1137_v49 = vld [vmem:[%s1799_s7 + $0x10] sm:$0xff] }
 0x347   : > { %v892_v45 = vpop.permute.xlu0 %891  ;;  %v1448_v46 = vpop.permute.xlu1 %1447 }
 0x348   : > { %v899_v48 = vsel %vm485_vm5, %v892_v45, %v1444_v44  ;;  %v1449_v50 = vunpack.i.l.bf16 %v1448_v46  ;;  %v1450_v55 = vunpack.i.h.bf16 %v1448_v46 }
 0x349   : > { %1362 = vmatpush3.bf16.msra.mxu1 %v790_v47 }
 0x34a   : > { %1363 = vmatprep.subr.bf16.mxu1 %v899_v48  ;;  %v1136_v48 = vld [vmem:[%s1799_s7 + $0x8] sm:$0xff] }
 0x34b   : > { %v804_v51 = vpop.permute.xlu0 %803  ;;  %v808_v52 = vpop.permute.xlu1 %807 }
 0x34c   : > { %v811_v53 = vsel %vm419_vm2, %v804_v51, %v1449_v50  ;;  %v812_v60 = vsel %vm419_vm2, %v808_v52, %v1450_v55  ;;  %v1135_v50 = vld [vmem:[%s1799_s7] sm:$0xff]  ;;  %v1138_v52 = vld [vmem:[%s1799_s7 + $0x18] sm:$0xff] }
 0x34d   : > { %1364 = vmatpush3.bf16.msra.mxu1 %v811_v53  ;;  %v1139_v51 = vld [vmem:[%s1800_s8] sm:$0xff]  ;;  %v1140_v53 = vld [vmem:[%s1800_s8 + $0x8] sm:$0xff] }
 0x34e   : > { %1365 = vmatprep.subr.bf16.mxu1 %v900_v54 }
 0x34f   : > { %v914_v57 = vpop.permute.xlu0 %913  ;;  %v1453_v58 = vpop.permute.xlu1 %1452 }
 0x350   : > { %v1454_v59 = vunpack.i.l.bf16 %v1453_v58  ;;  %v1455_v61 = vunpack.i.h.bf16 %v1453_v58 }
 0x351   : > { %1366 = vmatpush3.bf16.msra.mxu1 %v812_v60 }
 0x352   : > { %v921_v62 = vsel %vm502_vm8, %v914_v57, %v1454_v59  ;;  %v922_v2 = vsel %vm502_vm8, %v918_v31, %v1455_v61  ;;  %v1747_v31 = vld [vmem:[%s1802_s10] ss:$0 sm:$0xff] }
 0x353   : > { %v826_v63 = vpop.permute.xlu0 %825  ;;  %v828_v0 = vpop.permute.xlu1 %827  ;;  %1367 = vmatprep.subr.bf16.mxu1 %v921_v62 }
 0x354   : > { %v833_v1 = vsel %vm436_vm3, %v826_v63, %v828_v0 }
 0x355   : > { %1368 = vmatpush3.bf16.msra.mxu1 %v833_v1 }
 0x356   : > { %1369 = vmatprep.subr.bf16.mxu1 %v922_v2 }
 0x357   : > { %v832_v3 = vpop.permute.xlu0 %831  ;;  %v830_v4 = vpop.permute.xlu1 %829 }
 0x358   : > { %v834_v5 = vsel %vm436_vm3, %v830_v4, %v832_v3 }
 0x359   : > { %1370 = vmatpush3.bf16.msra.mxu1 %v834_v5 }
 0x35b   : > { %v938_v8 = vpop.permute.xlu0 %937  ;;  %v936_v9 = vpop.permute.xlu1 %935 }
 0x35c   : > { %1069 = vmatmul.mubr.bf16.vlgmr.msra.gmra.mrb[0].mxu1 %v1465_v6  ;;  %v943_v10 = vsel %vm518_vm7, %v936_v9, %v938_v8 }
 0x35d   : > { %1397 = vmatprep.subr.bf16.mxu0 %v943_v10  ;;  %1076 = vmatprep.mubr.bf16.mxu1 %v1468_v7 }
 0x35e   : > { %1398 = vmatpush3.bf16.msra.mxu0 %v943_v10 }
 0x35f   : > { %v942_v11 = vpop.permute.xlu0 %941  ;;  %v940_v12 = vpop.permute.xlu1 %939 }
 0x360   : > { %v944_v13 = vsel %vm518_vm7, %v940_v12, %v942_v11  ;;  %v1141_v11 = vld [vmem:[%s1800_s8 + $0x10] sm:$0xff]  ;;  %v1142_v12 = vld [vmem:[%s1800_s8 + $0x18] sm:$0xff] }
 0x361   : > { %1399 = vmatprep.subr.bf16.mxu0 %v944_v13 }
 0x362   : > { %1400 = vmatpush3.bf16.msra.mxu0 %v944_v13 }
 0x364   : > { %1077 = vmatmul.mubr.bf16.gmra.mrb[4].mxu1 %v1470_v14 }
 0x365   : > { %1402 = vmatmul.mubr.msk.bf16.vlgmr.msra.gmra.mrb[4].mxu0 %vm1029_vm10, %v1472_v15 }
 0x370   : > { %v982_v17 = vpop.permute.xlu1 %981  ;;  %v987_v22 = vpop.permute.xlu0 %986 }
 0x374   : > { %v992_v23 = vpop.permute.xlu1 %991  ;;  %v997_v39 = vpop.permute.xlu0 %996 }
 0x42f   : > { %v1371_v56 = vpop.f32.mrb[0].mxu1 }
 0x430   : > { %v1372_v16 = vpop.f32.mrb[1].mxu1 }
 0x431   : > { %v1373_v18 = vadd.f32 %v1372_v16, %v1371_v56  ;;  %v1374_v20 = vpop.f32.mrb[2].mxu1 }
 0x432   : > { %v1375_v19 = vpop.f32.mrb[3].mxu1 }
 0x433   : > { %v1376_v21 = vadd.f32 %v1375_v19, %v1374_v20  ;;  %v1071_v27 = vadd.f32 %v1373_v18, %v982_v17 }
 0x435   : > { %v1074_v35 = vadd.f32 %v1376_v21, %v987_v22 }
 0x437   : > { %v1377_v24 = vpop.f32.mrb[4].mxu1 }
 0x438   : > { %v1378_v25 = vpop.f32.mrb[5].mxu1  ;;  %v1403_v26 = vpop.f32.mrb[4].mxu0 }
 0x439   : > { %v1379_v28 = vadd.f32 %v1378_v25, %v1377_v24  ;;  %v1380_v29 = vpop.f32.mrb[6].mxu1  ;;  %v1119_v30 = vpop.f32.mrb[5].mxu0 }
 0x43a   : > { %v1120_v32 = vadd.f32 %v1119_v30, %v1071_v27  ;;  %v1381_v33 = vpop.f32.mrb[7].mxu1  ;;  %v1404_v34 = vpop.f32.mrb[6].mxu0 }
 0x43b   : > { %v1079_v36 = vadd.f32 %v1379_v28, %v992_v23  ;;  %v1382_v37 = vadd.f32 %v1381_v33, %v1380_v29  ;;  %v1122_v38 = vpop.f32.mrb[7].mxu0 }
 0x43c   : > { %v1123_v40 = vadd.f32 %v1122_v38, %v1074_v35  ;;  %v1149_v41 = vmul.f32 %v1747_v31, %v1120_v32 }
 0x43d   : > { %v1128_v42 = vadd.f32 %v1403_v26, %v1079_v36  ;;  %v1082_v43 = vadd.f32 %v1382_v37, %v997_v39 }
 0x43e   : > { %1153 = vadd.xlane.f32.xlu1 %v1149_v41  ;;  %v1150_v44 = vmul.f32 %v1747_v31, %v1123_v40 }
 0x43f   : > { %v1131_v45 = vadd.f32 %v1404_v34, %v1082_v43  ;;  %v1151_v47 = vmul.f32 %v1747_v31, %v1128_v42 }
 0x440   : > { %1155 = vadd.xlane.f32.xlu0 %v1150_v44 }
 0x441   : > { %v1152_v46 = vmul.f32 %v1747_v31, %v1131_v45 }
 0x443   : > { %1159 = vadd.xlane.f32.xlu1 %v1152_v46 }
 0x444   : > { %1157 = vadd.xlane.f32.xlu0 %v1151_v47 }
 0x454   : > { %1208 = vperm.xlu1 %1425, %v1136_v48  }
 0x458   : > { %1213 = vperm.xlu1 %1425, %v1137_v49  }
 0x45a   : > { %1203 = vperm.xlu0 %1424, %v1135_v50  }
 0x45c   : > { %1227 = vperm.xlu1 %1425, %v1139_v51  }
 0x45e   : > { %1218 = vperm.xlu0 %1424, %v1138_v52  }
 0x462   : > { %1232 = vperm.xlu0 %1424, %v1140_v53  }
 0x4cb   : > { %v1154_v54 = vpop.xlane.xlu1 %1153 }
 0x4cc   : > { %v1161_v55 = vmul.f32 0.015625, %v1154_v54 }
 0x4cd   : > { %v1156_v57 = vpop.xlane.xlu0 %1155 }
 0x4ce   : > { %v1165_v58 = vsub.f32 %v1120_v32, %v1161_v55  ;;  %v1162_v59 = vmul.f32 0.015625, %v1156_v57 }
 0x4d0   : > { %v1166_v60 = vsub.f32 %v1123_v40, %v1162_v59  ;;  %v1160_v61 = vpop.xlane.xlu1 %1159  ;;  %v1169_v62 = vmul.f32 %v1747_v31, %v1165_v58 }
 0x4d1   : > { %v1164_v63 = vmul.f32 0.015625, %v1160_v61  ;;  %v1158_v0 = vpop.xlane.xlu0 %1157 }
 0x4d2   : > { %v1163_v1 = vmul.f32 0.015625, %v1158_v0  ;;  %v1173_v2 = vmul.f32 %v1169_v62, %v1169_v62  ;;  %v1170_v3 = vmul.f32 %v1747_v31, %v1166_v60 }
 0x4d3   : > { %v1168_v4 = vsub.f32 %v1131_v45, %v1164_v63 }
 0x4d4   : > { %v1167_v5 = vsub.f32 %v1128_v42, %v1163_v1  ;;  %1177 = vadd.xlane.f32.xlu0 %v1173_v2  ;;  %v1174_v6 = vmul.f32 %v1170_v3, %v1170_v3  ;;  %v1209_v14 = vpop.permute.xlu1 %1208 }
 0x4d5   : > { %v1172_v7 = vmul.f32 %v1747_v31, %v1168_v4 }
 0x4d6   : > { %1179 = vadd.xlane.f32.xlu1 %v1174_v6  ;;  %v1171_v8 = vmul.f32 %v1747_v31, %v1167_v5 }
 0x4d7   : > { %v1176_v9 = vmul.f32 %v1172_v7, %v1172_v7 }
 0x4d8   : > { %v1175_v10 = vmul.f32 %v1171_v8, %v1171_v8  ;;  %v1214_v56 = vpop.permute.xlu1 %1213 }
 0x4d9   : > { %v1204_v13 = vpop.permute.xlu0 %1203 }
 0x4da   : > { %1181 = vadd.xlane.f32.xlu0 %v1175_v10  ;;  %1183 = vadd.xlane.f32.xlu1 %v1176_v9 }
 0x4dc   : > { %v1228_v17 = vpop.permute.xlu1 %1227 }
 0x4dd   : > { %v1219_v15 = vpop.permute.xlu0 %1218 }
 0x4e1   : > { %v1233_v16 = vpop.permute.xlu0 %1232 }
 0x4eb   : > { %1237 = vperm.xlu1 %1425, %v1141_v11  }
 0x4f0   : > { %1242 = vperm.xlu0 %1424, %v1142_v12  }
 0x561   : > { %v1178_v18 = vpop.xlane.xlu0 %1177 }
 0x562   : > { %v1185_v20 = vmul.f32 0.015625, %v1178_v18 }
 0x563   : > { %v1180_v19 = vpop.xlane.xlu1 %1179 }
 0x564   : > { %v1189_v21 = vadd.f32 1e-05, %v1185_v20  ;;  %v1186_v22 = vmul.f32 0.015625, %v1180_v19 }
 0x566   : > { %1481 = vrsqrt.f32 %v1189_v21  ;;  %v1190_v23 = vadd.f32 1e-05, %v1186_v22 }
 0x567   : > { %v1182_v24 = vpop.xlane.xlu0 %1181  ;;  %v1184_v25 = vpop.xlane.xlu1 %1183 }
 0x568   : > { %1483 = vrsqrt.f32 %v1190_v23  ;;  %v1187_v26 = vmul.f32 0.015625, %v1182_v24  ;;  %v1188_v27 = vmul.f32 0.015625, %v1184_v25 }
 0x56a   : > { %v1191_v28 = vadd.f32 1e-05, %v1187_v26  ;;  %v1192_v29 = vadd.f32 1e-05, %v1188_v27 }
 0x56b   : > { %v1238_v47 = vpop.permute.xlu1 %1237 }
 0x56c   : > { %1485 = vrsqrt.f32 %v1191_v28 }
 0x56d   : > { %1487 = vrsqrt.f32 %v1192_v29 }
 0x56f   : > { %v1243_v51 = vpop.permute.xlu0 %1242 }
 0x570   : > { %v1482_v30 = vpop.eup %1481 }
 0x571   : > { %v1197_v32 = vmul.f32 %v1482_v30, %v1169_v62 }
 0x572   : > { %v1484_v33 = vpop.eup %1483 }
 0x573   : > { %v1221_v34 = vmul.f32 %v1204_v13, %v1197_v32  ;;  %v1198_v35 = vmul.f32 %v1484_v33, %v1170_v3 }
 0x575   : > { %v1245_v36 = vadd.f32 %v1228_v17, %v1221_v34  ;;  %v1222_v37 = vmul.f32 %v1209_v14, %v1198_v35 }
 0x576   : > { %v1486_v38 = vpop.eup %1485 }
 0x577   : > { %v1488_v39 = vpop.eup %1487  ;;  %v1246_v40 = vadd.f32 %v1233_v16, %v1222_v37  ;;  %v1199_v41 = vmul.f32 %v1486_v38, %v1171_v8  ;;  %v1249_v42 = vmax.f32 %v1245_v36, 0.0 }
 0x578   : > { %v1200_v43 = vmul.f32 %v1488_v39, %v1172_v7 }
 0x579   : > { %v1223_v44 = vmul.f32 %v1214_v56, %v1199_v41  ;;  %v1250_v45 = vmax.f32 %v1246_v40, 0.0  ;;  %v1253_v46 = vmul.f32 %v1747_v31, %v1249_v42 }
 0x57a   : > { %v1224_v48 = vmul.f32 %v1219_v15, %v1200_v43 }
 0x57b   : > { %v1254_v49 = vmul.f32 %v1747_v31, %v1250_v45  ;;  %1257 = vst [vmem:[%s386_s15] sm:$0xff] %v1253_v46  ;;  %v1247_v50 = vadd.f32 %v1238_v47, %v1223_v44 }
 0x57c   : > { %v1248_v52 = vadd.f32 %v1243_v51, %v1224_v48 }
 0x57d   : > { %1258 = vst [vmem:[%s386_s15 + $0x8] sm:$0xff] %v1254_v49  ;;  %v1251_v53 = vmax.f32 %v1247_v50, 0.0 }
 0x57e   : > { %v1252_v54 = vmax.f32 %v1248_v52, 0.0 }
 0x57f   : > { %v1255_v55 = vmul.f32 %v1747_v31, %v1251_v53 }
 0x580   : > { %v1256_v57 = vmul.f32 %v1747_v31, %v1252_v54 }
 0x581   : > { %1259 = vst [vmem:[%s386_s15 + $0x10] sm:$0xff] %v1255_v55 }
 0x582   : > { %1260 = vst [vmem:[%s386_s15 + $0x18] sm:$0xff] %v1256_v57 }
 0x583 PF: > { %s21_s17 = sadd.s32 1, %s1495_s17  }
 0x584   : > { %p18_p4 = scmp.ge.s32.totalorder %s21_s17, 4  }
 0x586   :  { %20 = sbr.rel (!%p18_p4) target bundleno = 1 (0x1), region = 94 }

</bundles_post_ra>
